<compile_context>
chip_gen: v5e
topology: v5e:2x2
jax: 0.10.0
libtpu: 0.0.40
codegen_flags: <defaults>
</compile_context>

<pallas_src>
import functools

import jax
import jax.numpy as jnp
from jax.experimental import pallas as pl
from jax.experimental.pallas import tpu as pltpu


def qnet_kernel(x_ref, w1_ref, b1_ref, w2_ref, b2_ref, out_ref):
    # x: (TB, S) original dtype; w1: (S, Hp) bf16; b1: (1, Hp) f32
    # w2: (Hp, Ap) bf16; b2: (1, Ap) f32 (padded action cols are -1e30)
    x = x_ref[...].astype(jnp.bfloat16)          # bf16 cast in-kernel (no wrapper pass)
    # fc1 + ReLU (MXU bf16 matmul, f32 accumulate)
    h = jnp.dot(x, w1_ref[...], preferred_element_type=jnp.float32) + b1_ref[...]
    h = jnp.maximum(h, 0.0)
    # fc2
    logits = jnp.dot(h.astype(jnp.bfloat16), w2_ref[...],
                     preferred_element_type=jnp.float32) + b2_ref[...]
    # Numerically-stable softmax over last dim, in f32.  Padded action columns carry a
    # -1e30 f32 bias, so exp underflows to exactly 0 and they get zero probability mass.
    m = jnp.max(logits, axis=-1, keepdims=True)
    e = jnp.exp(logits - m)
    denom = jnp.sum(e, axis=-1, keepdims=True)
    out_ref[...] = (e * pl.reciprocal(denom)).astype(out_ref.dtype)


def _round_up(v, m):
    return ((v + m - 1) // m) * m


def prepare_qnet_params(w1, b1, w2, b2):
    """One-time padding/casting of Qnet parameters.

    Call once at model init (NOT per forward step): pads hidden/action dims to 128
    lanes, casts weights to bf16 (MXU-native), keeps biases f32, and marks padded
    action columns with a -1e30 bias so softmax ignores them.
    Weights are stored pre-transposed as (in, out), i.e. PyTorch Linear weight.T.
    """
    S, H = w1.shape
    A = w2.shape[1]
    Hp = max(128, _round_up(H, 128))
    Ap = max(128, _round_up(A, 128))

    w1p = jnp.zeros((S, Hp), jnp.bfloat16).at[:, :H].set(w1.astype(jnp.bfloat16))
    b1p = jnp.zeros((1, Hp), jnp.float32).at[:, :H].set(
        jnp.reshape(b1, (1, H)).astype(jnp.float32))
    w2p = jnp.zeros((Hp, Ap), jnp.bfloat16).at[:H, :A].set(w2.astype(jnp.bfloat16))
    b2p = jnp.full((1, Ap), -1e30, jnp.float32).at[:, :A].set(
        jnp.reshape(b2, (1, A)).astype(jnp.float32))
    return w1p, b1p, w2p, b2p, A


@functools.partial(jax.jit, static_argnames=("action_size", "block_b"))
def qnet_forward(x, w1p, b1p, w2p, b2p, *, action_size, block_b=8192):
    """x: (B, S) float.  Padded params from prepare_qnet_params.

    Returns softmax(relu(x @ w1 + b1) @ w2 + b2) of shape (B, action_size), f32.
    """
    B, S = x.shape
    Hp = w1p.shape[1]
    Ap = w2p.shape[1]

    # Batch tiling: multiple of 8 sublanes.  Large batches get >= 2 grid steps so
    # v7x's two TensorCores both run (dimension_semantics=("parallel",)); small
    # batches use a single fat tile (best for single-TC v5e/v6e: fewer, fatter tiles).
    B8 = _round_up(B, 8)
    if B8 >= 128:
        target_tiles = max(2, pl.cdiv(B8, block_b))
    else:
        target_tiles = 1
    TB = min(block_b, _round_up(pl.cdiv(B8, target_tiles), 8))
    nb = pl.cdiv(B8, TB)
    Bp = nb * TB

    # Pass x through at its original dtype; only pad (fusible) when the batch is ragged.
    xp = x if Bp == B else jnp.pad(x, ((0, Bp - B), (0, 0)))

    cost = pl.CostEstimate(
        flops=2 * Bp * S * Hp + 2 * Bp * Hp * Ap,
        transcendentals=Bp * Ap,
        bytes_accessed=(xp.size * xp.dtype.itemsize
                        + w1p.size * 2 + w2p.size * 2
                        + b1p.size * 4 + b2p.size * 4
                        + Bp * Ap * 2),
    )

    out = pl.pallas_call(
        qnet_kernel,
        # bf16 output: lane-dense (128 wide) and half the HBM writeback of f32.
        out_shape=jax.ShapeDtypeStruct((Bp, Ap), jnp.bfloat16),
        grid=(nb,),
        in_specs=[
            pl.BlockSpec((TB, S), lambda i: (i, 0)),    # x: streamed per batch tile
            pl.BlockSpec((S, Hp), lambda i: (0, 0)),    # w1: VMEM-resident
            pl.BlockSpec((1, Hp), lambda i: (0, 0)),    # b1: VMEM-resident
            pl.BlockSpec((Hp, Ap), lambda i: (0, 0)),   # w2: VMEM-resident
            pl.BlockSpec((1, Ap), lambda i: (0, 0)),    # b2: VMEM-resident
        ],
        out_specs=pl.BlockSpec((TB, Ap), lambda i: (i, 0)),
        compiler_params=pltpu.CompilerParams(
            dimension_semantics=("parallel",),
            vmem_limit_bytes=32 * 1024 * 1024,   # fits v7x 64 MiB physical; raise if block_b grows
        ),
        cost_estimate=cost,
    )(xp, w1p, b1p, w2p, b2p)

    # Tiny slice + f32 upcast of the useful corner; fused by XLA inside this jit.
    return out[:B, :action_size].astype(jnp.float32)


def _reference_f32(x, w1, b1, w2, b2):
    h = jnp.maximum(x @ w1 + jnp.reshape(b1, (1, -1)), 0.0)
    return jax.nn.softmax(h @ w2 + jnp.reshape(b2, (1, -1)), axis=-1)


def _reference_bf16(x, w1, b1, w2, b2):
    xb, w1b, w2b = (a.astype(jnp.bfloat16) for a in (x, w1, w2))
    h = jnp.dot(xb, w1b, preferred_element_type=jnp.float32) + jnp.reshape(b1, (1, -1))
    h = jnp.maximum(h, 0.0)
    logits = jnp.dot(h.astype(jnp.bfloat16), w2b,
                     preferred_element_type=jnp.float32) + jnp.reshape(b2, (1, -1))
    return jax.nn.softmax(logits, axis=-1)


if __name__ == "__main__":
    # Shapes consistent with Qnet(state_size, hidden_dim, action_size)
    batch, state_size, hidden_dim, action_size = 4, 16, 32, 8

    key = jax.random.PRNGKey(0)
    kx, k1, kb1, k2, kb2, kx2 = jax.random.split(key, 6)

    x = jax.random.normal(kx, (batch, state_size), dtype=jnp.float32)
    # PyTorch Linear stores (out, in); we keep weights pre-transposed as (in, out).
    w1 = jax.random.normal(k1, (state_size, hidden_dim), dtype=jnp.float32) * 0.1
    b1 = jax.random.normal(kb1, (hidden_dim,), dtype=jnp.float32) * 0.1
    w2 = jax.random.normal(k2, (hidden_dim, action_size), dtype=jnp.float32) * 0.1
    b2 = jax.random.normal(kb2, (action_size,), dtype=jnp.float32) * 0.1

    # One-time parameter preparation (hoisted out of the per-step forward).
    w1p, b1p, w2p, b2p, A = prepare_qnet_params(w1, b1, w2, b2)

    # --- small batch (matches module usage) ---
    out = qnet_forward(x, w1p, b1p, w2p, b2p, action_size=A)
    jax.block_until_ready(out)

    ref_bf16 = _reference_bf16(x, w1, b1, w2, b2)
    ref_f32 = _reference_f32(x, w1, b1, w2, b2)
    assert out.shape == (batch, action_size)
    assert jnp.allclose(out, ref_bf16, atol=5e-3, rtol=5e-3), "mismatch vs bf16 reference"
    assert jnp.allclose(out, ref_f32, atol=2e-2, rtol=2e-2), "mismatch vs f32 reference"
    assert jnp.allclose(jnp.sum(out, axis=-1), 1.0, atol=5e-3), "softmax rows must sum to ~1"

    # --- larger, non-aligned batch exercises the multi-tile grid (>=2 parallel steps) ---
    B2 = 200
    x2 = jax.random.normal(kx2, (B2, state_size), dtype=jnp.float32)
    out2 = qnet_forward(x2, w1p, b1p, w2p, b2p, action_size=A, block_b=64)
    jax.block_until_ready(out2)
    ref2 = _reference_bf16(x2, w1, b1, w2, b2)
    assert out2.shape == (B2, action_size)
    assert jnp.allclose(out2, ref2, atol=5e-3, rtol=5e-3), "mismatch vs reference (tiled batch)"
    assert jnp.allclose(jnp.sum(out2, axis=-1), 1.0, atol=5e-3), "softmax rows must sum to ~1"

    print("KERNEL_OK")
</pallas_src>

<mosaic_0001>
module attributes {stable_mosaic.version = 11 : i64} {
  func.func @qnet_kernel(%arg0: i32, %arg1: memref<8x16xf32, #tpu.memory_space<vmem>>, %arg2: memref<16x128xbf16, #tpu.memory_space<vmem>>, %arg3: memref<1x128xf32, #tpu.memory_space<vmem>>, %arg4: memref<128x128xbf16, #tpu.memory_space<vmem>>, %arg5: memref<1x128xf32, #tpu.memory_space<vmem>>, %arg6: memref<8x128xbf16, #tpu.memory_space<vmem>>) attributes {dimension_semantics = [#tpu.dimension_semantics<parallel>], iteration_bounds = array<i64: 1>, scalar_prefetch = 0 : i64, scratch_operands = 0 : i64, tpu.core_type = #tpu.core_type<tc>, window_params = [{transform_indices = @transform_0, window_bounds = array<i64: 8, 16>}, {pipeline_mode = #tpu.pipeline_mode<synchronous>, transform_indices = @transform_1, window_bounds = array<i64: 16, 128>}, {pipeline_mode = #tpu.pipeline_mode<synchronous>, transform_indices = @transform_2, window_bounds = array<i64: 1, 128>}, {pipeline_mode = #tpu.pipeline_mode<synchronous>, transform_indices = @transform_3, window_bounds = array<i64: 128, 128>}, {pipeline_mode = #tpu.pipeline_mode<synchronous>, transform_indices = @transform_4, window_bounds = array<i64: 1, 128>}, {transform_indices = @transform_5, window_bounds = array<i64: 8, 128>}]} {
    %c0 = arith.constant 0 : index
    %c0_0 = arith.constant 0 : index
    %0 = vector.load %arg1[%c0, %c0_0] : memref<8x16xf32, #tpu.memory_space<vmem>>, vector<8x16xf32>
    %1 = arith.truncf %0 : vector<8x16xf32> to vector<8x16xbf16>
    %c0_1 = arith.constant 0 : index
    %c0_2 = arith.constant 0 : index
    %2 = vector.load %arg2[%c0_1, %c0_2] : memref<16x128xbf16, #tpu.memory_space<vmem>>, vector<16x128xbf16>
    %cst = arith.constant dense<0.000000e+00> : vector<8x128xf32>
    %3 = tpu.matmul %1, %2, %cst {dimension_numbers = #tpu.dot_dimension_numbers<[1], [0], [0], [1], [0, 0, 1, 1], [], []>} : vector<8x16xbf16>, vector<16x128xbf16>, vector<8x128xf32> -> vector<8x128xf32>
    %c0_3 = arith.constant 0 : index
    %c0_4 = arith.constant 0 : index
    %4 = vector.load %arg3[%c0_3, %c0_4] : memref<1x128xf32, #tpu.memory_space<vmem>>, vector<1x128xf32>
    %5 = vector.broadcast %4 : vector<1x128xf32> to vector<8x128xf32>
    %6 = arith.addf %3, %5 : vector<8x128xf32>
    %cst_5 = arith.constant 0.000000e+00 : f32
    %7 = vector.broadcast %cst_5 : f32 to vector<8x128xf32>
    %8 = arith.maximumf %6, %7 : vector<8x128xf32>
    %9 = arith.truncf %8 : vector<8x128xf32> to vector<8x128xbf16>
    %c0_6 = arith.constant 0 : index
    %c0_7 = arith.constant 0 : index
    %10 = vector.load %arg4[%c0_6, %c0_7] : memref<128x128xbf16, #tpu.memory_space<vmem>>, vector<128x128xbf16>
    %cst_8 = arith.constant dense<0.000000e+00> : vector<8x128xf32>
    %11 = tpu.matmul %9, %10, %cst_8 {dimension_numbers = #tpu.dot_dimension_numbers<[1], [0], [0], [1], [0, 0, 1, 1], [], []>} : vector<8x128xbf16>, vector<128x128xbf16>, vector<8x128xf32> -> vector<8x128xf32>
    %c0_9 = arith.constant 0 : index
    %c0_10 = arith.constant 0 : index
    %12 = vector.load %arg5[%c0_9, %c0_10] : memref<1x128xf32, #tpu.memory_space<vmem>>, vector<1x128xf32>
    %13 = vector.broadcast %12 : vector<1x128xf32> to vector<8x128xf32>
    %14 = arith.addf %11, %13 : vector<8x128xf32>
    %cst_11 = arith.constant dense<0xFF800000> : vector<8xf32>
    %15 = vector.multi_reduction <maximumf>, %14, %cst_11 [1] : vector<8x128xf32> to vector<8xf32>
    %16 = vector.shape_cast %15 : vector<8xf32> to vector<8x1xf32>
    %17 = vector.broadcast %16 : vector<8x1xf32> to vector<8x128xf32>
    %18 = arith.subf %14, %17 : vector<8x128xf32>
    %19 = math.exp %18 : vector<8x128xf32>
    %cst_12 = arith.constant dense<0.000000e+00> : vector<8xf32>
    %20 = vector.multi_reduction <add>, %19, %cst_12 [1] : vector<8x128xf32> to vector<8xf32>
    %21 = vector.shape_cast %20 : vector<8xf32> to vector<8x1xf32>
    %22 = tpu.reciprocal %21 : vector<8x1xf32> -> vector<8x1xf32>
    %23 = vector.broadcast %22 : vector<8x1xf32> to vector<8x128xf32>
    %24 = arith.mulf %19, %23 : vector<8x128xf32>
    %25 = arith.truncf %24 : vector<8x128xf32> to vector<8x128xbf16>
    %c0_13 = arith.constant 0 : index
    %c0_14 = arith.constant 0 : index
    %26 = vector.load %arg6[%c0_13, %c0_14] : memref<8x128xbf16, #tpu.memory_space<vmem>>, vector<8x128xbf16>
    tpu.vector_store %arg6[%c0_13, %c0_14], %25 {strides = array<i32>} : memref<8x128xbf16, #tpu.memory_space<vmem>>, vector<8x128xbf16>,
    return
  }
  func.func @transform_0(%arg0: i32) -> (i32, i32) {
    %c0_i32 = arith.constant 0 : i32
    %c0_i32_0 = arith.constant 0 : i32
    return %arg0, %c0_i32 : i32, i32
  }
  func.func @transform_1(%arg0: i32) -> (i32, i32) {
    %c0_i32 = arith.constant 0 : i32
    %c0_i32_0 = arith.constant 0 : i32
    %c0_i32_1 = arith.constant 0 : i32
    return %c0_i32, %c0_i32_0 : i32, i32
  }
  func.func @transform_2(%arg0: i32) -> (i32, i32) {
    %c0_i32 = arith.constant 0 : i32
    %c0_i32_0 = arith.constant 0 : i32
    %c0_i32_1 = arith.constant 0 : i32
    return %c0_i32, %c0_i32_0 : i32, i32
  }
  func.func @transform_3(%arg0: i32) -> (i32, i32) {
    %c0_i32 = arith.constant 0 : i32
    %c0_i32_0 = arith.constant 0 : i32
    %c0_i32_1 = arith.constant 0 : i32
    return %c0_i32, %c0_i32_0 : i32, i32
  }
  func.func @transform_4(%arg0: i32) -> (i32, i32) {
    %c0_i32 = arith.constant 0 : i32
    %c0_i32_0 = arith.constant 0 : i32
    %c0_i32_1 = arith.constant 0 : i32
    return %c0_i32, %c0_i32_0 : i32, i32
  }
  func.func @transform_5(%arg0: i32) -> (i32, i32) {
    %c0_i32 = arith.constant 0 : i32
    %c0_i32_0 = arith.constant 0 : i32
    return %arg0, %c0_i32 : i32, i32
  }
}

</mosaic_0001>

<bundles_post_ra>
// kernel: qnet_forward.1
= control target key start
LH: loop header
LB: loop body
LE: loop exit
PB: predicated region body
PF: predicated region fallthrough
CT: control target
= control target key end

     0   :  { %10 = vsyncpa [#allocation3], 0  ;;  %s261_s21 = smov [#allocation2]   ;;  %s262_s23 = smov 64   ;;  %s312_s0 = inlined_call_operand.vmem [shape: f32[8,16], index: 0, kind: input, shape index: {}]   ;;  %s313_s1 = inlined_call_operand.vmem [shape: bf16[16,128], index: 1, kind: input, shape index: {}]   ;;  %s314_s2 = inlined_call_operand.vmem [shape: f32[1,128], index: 2, kind: input, shape index: {}]   ;;  %s315_s3 = inlined_call_operand.hbm [shape: bf16[128,128], index: 3, kind: input, shape index: {}]   ;;  %s316_s4 = inlined_call_operand.vmem [shape: f32[1,128], index: 4, kind: input, shape index: {}]   ;;  %s317_s5 = inlined_call_operand.vmem [shape: bf16[8,128], index: 5, kind: output, shape index: {}]  }
   0x1   :  { %s21_s20 = sshll.u32 %s315_s3, 4  ;;  %s23_s22 = sshll.u32 %s261_s21, 4  ;;  %s22_s20 = int_to_ptr.hbm [resolvable:$true] %s21_s20  ;;  %s24_s22 = int_to_ptr.vmem [resolvable:$true] %s23_s22 }
   0x2   :  { %s263_s24 = smov 4  }
   0x3   :  { %29 = dma.hbm_to_vmem [thread:$0]  %s22_s20, 1024, %s24_s22, [#allocation3], %s262_s23, %s262_s23, %s263_s24  }
   0x4   :  { %259 = dma.done.wait [#allocation3], 1024  }
   0x5   :  { %260 = vsyncadd [#allocation3], 4294966272  ;;  %v217_v0 = vld [vmem:[%s313_s1] sm:$0xff]  ;;  %v225_v2 = vld [vmem:[#allocation2 + $0x38] sm:$0xff]  ;;  %vm51_vm0 = vcmask 130048  }
   0x6   :  { %v37_v1 = vld [vmem:[%s312_s0] sm:$0xff]  ;;  %62 = vmatpush.bf16.msra.mxu0 %v217_v0  ;;  %138 = vmatpush.bf16.msra.mxu1 %v225_v2  ;;  %v224_v4 = vld [vmem:[#allocation2 + $0x30] sm:$0xff]  ;;  %v223_v5 = vld [vmem:[#allocation2 + $0x28] sm:$0xff] }
   0x7   :  { %v38_v3 = vpack.c.bf16 %v37_v1, %v37_v1  ;;  %v222_v6 = vld [vmem:[#allocation2 + $0x20] sm:$0xff]  ;;  %v221_v7 = vld [vmem:[#allocation2 + $0x18] sm:$0xff]  ;;  %v220_v8 = vld [vmem:[#allocation2 + $0x10] sm:$0xff] }
   0x8   :  { %v219_v9 = vld [vmem:[#allocation2 + $0x8] sm:$0xff]  ;;  %v218_v10 = vld [vmem:[#allocation2] sm:$0xff] }
   0x9   :  { %184 = vmatmul.msk.bf16.vlgmr.msra.gmra.mxu0 %vm51_vm0, %v38_v3  ;;  %v229_v11 = vld [vmem:[%s314_s2] ss:$0 sm:$0xff] }
   0xa   :  { %139 = vmatpush.bf16.msra.mxu1 %v224_v4  ;;  %v230_v17 = vld [vmem:[%s316_s4] ss:$0 sm:$0xff] }
   0xe   :  { %140 = vmatpush.bf16.msra.mxu1 %v223_v5 }
  0x12   :  { %141 = vmatpush.bf16.msra.mxu1 %v222_v6 }
  0x16   :  { %142 = vmatpush.bf16.msra.mxu1 %v221_v7 }
  0x1a   :  { %143 = vmatpush.bf16.msra.mxu1 %v220_v8 }
  0x1e   :  { %144 = vmatpush.bf16.msra.mxu1 %v219_v9 }
  0x22   :  { %145 = vmatpush.bf16.msra.mxu1 %v218_v10 }
  0x86   :  { %v64_v12 = vpop.f32.mrf.mxu0 }
  0x87   :  { %v65_v13 = vadd.f32 %v229_v11, %v64_v12 }
  0x89   :  { %v68_v14 = vmax.f32 %v65_v13, 0.0 }
  0x8b   :  { %v69_v15 = vpack.c.bf16 %v68_v14, %v68_v14 }
  0x8d   :  { %146 = vmatmul.bf16.vlgmr.msra.gmra.mxu1 %v69_v15 }
  0x8e   :  { %v66_v16 = vpop.f32.mrf.mxu0 }
 0x10a   :  { %v147_v18 = vpop.f32.mrf.mxu1 }
 0x10b   :  { %v148_v19 = vadd.f32 %v230_v17, %v147_v18 }
 0x10d   :  { %151 = vmax.xlane.f32.xlu0 %v148_v19 }
 0x112   :  { %v149_v20 = vpop.f32.mrf.mxu1 }
 0x180   :  { %v152_v21 = vpop.xlane.xlu0 %151 }
 0x181   :  { %v153_v22 = vsub.f32 %v148_v19, %v152_v21 }
 0x183   :  { %v154_v23 = vmul.f32 1.442695, %v153_v22 }
 0x185   :  { %231 = vpow2.f32 %v154_v23 }
 0x18b   :  { %v232_v24 = vpop.eup %231 }
 0x18c   :  { %156 = vadd.xlane.f32.xlu0 %v232_v24 }
 0x1ff   :  { %v157_v25 = vpop.xlane.xlu0 %156 }
 0x200   :  { %233 = vrcp.f32 %v157_v25  ;;  %v169_v29 = vand.u32 2147483648, %v157_v25  ;;  %v167_v31 = vand.u32 2147483647, %v157_v25  ;;  %vm163_vm2 = vweird.f32 %v157_v25 }
 0x202   :  { %v170_v33 = vor.u32 1.1754944e-38, %v169_v29  ;;  %vm168_vm4 = vcmp.eq.f32.partialorder %v167_v31, 8.507059e+37 }
 0x206   :  { %v234_v26 = vpop.eup %233 }
 0x207   :  { %v159_v27 = vmul.f32 %v234_v26, %v157_v25  ;;  %vm164_vm1 = vweird.f32 %v234_v26 }
 0x208   :  { %vm165_vm3 = vmor %vm163_vm2, %vm164_vm1 }
 0x209   :  { %v160_v28 = vsub.f32 1.0, %v159_v27 }
 0x20b   :  { %v161_v30 = vmul.f32 %v234_v26, %v160_v28 }
 0x20d   :  { %v162_v32 = vadd.f32 %v234_v26, %v161_v30 }
 0x20f   :  { %v166_v34 = vsel %vm165_vm3, %v234_v26, %v162_v32 }
 0x210   :  { %v171_v35 = vsel %vm168_vm4, %v170_v33, %v166_v34 }
 0x211   :  { %v172_v36 = vmul.f32 %v232_v24, %v171_v35 }
 0x213   :  { %v173_v37 = vpack.c.bf16 %v172_v36, %v172_v36 }
 0x215   :  { %174 = vst [vmem:[%s317_s5] sm:$0xf] %v173_v37 }
 0x216   :  { %179 = vsyncpa [#allocation3], 1 }

</bundles_post_ra>
